<compile_context>
chip_gen: v6e
topology: v6e:2x2x1
jax: 0.10.0
libtpu: 0.0.40
codegen_flags: <defaults>
</compile_context>

<pallas_src>
import jax
import jax.numpy as jnp
from jax.experimental import pallas as pl
from jax.experimental.pallas import tpu as pltpu

LANE = 128            # TPU lane width; every feature dim lives inside one lane tile.
BIAS_LANE = LANE - 1  # constant-1.0 lane -> biases folded into the matmuls.


# ----------------------------------------------------------------------------
# One-time parameter packing (run at init, NOT per forward call).
#
# Weight slab W: (128, 768) bf16, column blocks:
#   [0:128]    fc1    (rows [0:D] = w1,            bias row 127)
#   [128:384]  glu1   [value | gate] (rows [0:H] = h-part, rows [COFF:COFF+C]
#                      = cond-part, bias row 127)
#   [384:512]  fc2    (rows [0:H] = w2, bias row 127)
#   [512:768]  glu2   [value | gate] (rows [0:D], cond rows, bias row 127)
# Cond lanes are placed at COFF = 127 - C, just left of the bias lane, so the
# padded-lane-zero invariant holds for any D, H <= 127 - C.
# ----------------------------------------------------------------------------
def pack_params(params, input_dim, hidden_dim, condition_dim):
    D, H, C = input_dim, hidden_dim, condition_dim
    coff = LANE - 1 - C
    assert D <= coff and H <= coff, "toy dims must fit one lane tile with cond+bias"
    f32 = jnp.float32

    w1, b1 = params["w1"], params["b1"]          # (D,H),   (1,H)
    wg1, bg1 = params["wg1"], params["bg1"]      # (H+C,2H),(1,2H)
    w2, b2 = params["w2"], params["b2"]          # (H,D),   (1,D)
    wg2, bg2 = params["wg2"], params["bg2"]      # (D+C,2D),(1,2D)

    W = jnp.zeros((LANE, 6 * LANE), f32)
    # fc1
    W = W.at[:D, 0:H].set(w1)
    W = W.at[BIAS_LANE, 0:H].set(b1[0])
    # glu1: value cols [128:128+H], gate cols [256:256+H]
    W = W.at[:H, LANE:LANE + H].set(wg1[:H, :H])
    W = W.at[coff:coff + C, LANE:LANE + H].set(wg1[H:, :H])
    W = W.at[BIAS_LANE, LANE:LANE + H].set(bg1[0, :H])
    W = W.at[:H, 2 * LANE:2 * LANE + H].set(wg1[:H, H:])
    W = W.at[coff:coff + C, 2 * LANE:2 * LANE + H].set(wg1[H:, H:])
    W = W.at[BIAS_LANE, 2 * LANE:2 * LANE + H].set(bg1[0, H:])
    # fc2
    W = W.at[:H, 3 * LANE:3 * LANE + D].set(w2)
    W = W.at[BIAS_LANE, 3 * LANE:3 * LANE + D].set(b2[0])
    # glu2: value cols [512:512+D], gate cols [640:640+D]
    W = W.at[:D, 4 * LANE:4 * LANE + D].set(wg2[:D, :D])
    W = W.at[coff:coff + C, 4 * LANE:4 * LANE + D].set(wg2[D:, :D])
    W = W.at[BIAS_LANE, 4 * LANE:4 * LANE + D].set(bg2[0, :D])
    W = W.at[:D, 5 * LANE:5 * LANE + D].set(wg2[:D, D:])
    W = W.at[coff:coff + C, 5 * LANE:5 * LANE + D].set(wg2[D:, D:])
    W = W.at[BIAS_LANE, 5 * LANE:5 * LANE + D].set(bg2[0, D:])

    return W.astype(jnp.bfloat16)                # (128, 768) bf16, ~192 KiB


# ----------------------------------------------------------------------------
# Forward: builds the (Bp, 128) activation slab and runs the fused kernel.
#   act lanes: [0:D] = x, [COFF:COFF+C] = cond, [127] = 1.0 (bias lane).
# ----------------------------------------------------------------------------
@jax.jit
def resnet_block_pallas(x, condition, w_slab):
    B, D = x.shape
    C = condition.shape[1]
    coff = LANE - 1 - C
    assert D <= coff, "input_dim must fit left of the cond/bias lanes"
    Bp = max(8, ((B + 7) // 8) * 8)              # sublane-align the batch
    bf16, f32 = jnp.bfloat16, jnp.float32

    act = jnp.zeros((Bp, LANE), bf16)
    act = act.at[:B, :D].set(x.astype(bf16))
    act = act.at[:B, coff:coff + C].set(condition.astype(bf16))
    act = act.at[:B, BIAS_LANE].set(1.0)

    def kernel(act_ref, w_ref, out_ref):
        a0 = act_ref[...]                                         # (Bp, 128) bf16
        lane = jax.lax.broadcasted_iota(jnp.int32, a0.shape, 1)
        keep_right = lane >= coff
        extra = jnp.where(keep_right, a0, jnp.zeros_like(a0))     # cond + 1.0 lane
        x_only = jnp.where(keep_right, jnp.zeros_like(a0), a0)    # residual lanes

        def mm(a, c0, nc):                                        # bf16 in, f32 acc
            return jnp.dot(a, w_ref[:, c0:c0 + nc],
                           preferred_element_type=f32)

        # fc1 -> bn1 (Identity) -> ReLU   (bias folded via constant-1 lane)
        h1 = jnp.maximum(mm(a0, 0, LANE), 0.0)
        # GLU1: one fused [value | gate] matmul over [h1 | cond | 1]
        a1 = h1.astype(bf16) + extra
        g1 = mm(a1, LANE, 2 * LANE)
        o1 = g1[:, :LANE] * jax.nn.sigmoid(g1[:, LANE:])          # dropout = Identity
        # fc2 -> bn2 (Identity) -> ReLU
        a2 = o1.astype(bf16) + extra
        h2 = jnp.maximum(mm(a2, 3 * LANE, LANE), 0.0)
        # GLU2
        a3 = h2.astype(bf16) + extra
        g2 = mm(a3, 4 * LANE, 2 * LANE)
        o2 = g2[:, :LANE] * jax.nn.sigmoid(g2[:, LANE:])
        # residual add, lane-dense 128-wide store
        out_ref[...] = o2 + x_only.astype(f32)

    out = pl.pallas_call(
        kernel,
        out_shape=jax.ShapeDtypeStruct((Bp, LANE), f32),
        in_specs=[pl.BlockSpec(memory_space=pltpu.MemorySpace.VMEM)] * 2,
        out_specs=pl.BlockSpec(memory_space=pltpu.MemorySpace.VMEM),
    )(act, w_slab)

    return out[:B, :D]


# ----------------------------------------------------------------------------
# Parameter init (PyTorch nn.Linear-style uniform(+-1/sqrt(fan_in))),
# stored pre-transposed as [in_features, out_features].
# ----------------------------------------------------------------------------
def init_params(key, input_dim, hidden_dim, condition_dim):
    def linear(key, fan_in, fan_out):
        kw, kb = jax.random.split(key)
        bound = 1.0 / jnp.sqrt(fan_in)
        w = jax.random.uniform(kw, (fan_in, fan_out), jnp.float32, -bound, bound)
        b = jax.random.uniform(kb, (1, fan_out), jnp.float32, -bound, bound)
        return w, b

    k1, k2, k3, k4 = jax.random.split(key, 4)
    w1, b1 = linear(k1, input_dim, hidden_dim)                          # fc1
    wg1, bg1 = linear(k2, hidden_dim + condition_dim, 2 * hidden_dim)   # glu1
    w2, b2 = linear(k3, hidden_dim, input_dim)                          # fc2
    wg2, bg2 = linear(k4, input_dim + condition_dim, 2 * input_dim)     # glu2
    return {"w1": w1, "b1": b1, "wg1": wg1, "bg1": bg1,
            "w2": w2, "b2": b2, "wg2": wg2, "bg2": bg2}


# ----------------------------------------------------------------------------
# Pure-JAX reference. compute_dtype=bfloat16 mirrors the kernel's precision
# (bf16 matmul inputs, f32 accumulation, f32 elementwise); float32 is the
# exact original-module semantics.
# ----------------------------------------------------------------------------
def resnet_block_ref(x, cond, p, compute_dtype=jnp.float32):
    f32 = jnp.float32
    cd = compute_dtype
    H = p["w1"].shape[1]
    D = p["w2"].shape[1]

    def lin(a, w, b):
        return (jnp.dot(a.astype(cd), w.astype(cd), preferred_element_type=f32)
                + b.astype(cd).astype(f32))

    h1 = jnp.maximum(lin(x, p["w1"], p["b1"]), 0.0)
    g1 = lin(jnp.concatenate([h1, cond], axis=-1), p["wg1"], p["bg1"])
    o1 = g1[:, :H] * jax.nn.sigmoid(g1[:, H:])
    h2 = jnp.maximum(lin(o1, p["w2"], p["b2"]), 0.0)
    g2 = lin(jnp.concatenate([h2, cond], axis=-1), p["wg2"], p["bg2"])
    o2 = g2[:, :D] * jax.nn.sigmoid(g2[:, D:])
    return o2 + x.astype(cd).astype(f32)


if __name__ == "__main__":
    B, INPUT_DIM, HIDDEN_DIM, COND_DIM = 8, 16, 32, 8

    key = jax.random.PRNGKey(0)
    kx, kc, kp = jax.random.split(key, 3)
    x = jax.random.normal(kx, (B, INPUT_DIM), jnp.float32)
    condition = jax.random.normal(kc, (B, COND_DIM), jnp.float32)
    params = init_params(kp, INPUT_DIM, HIDDEN_DIM, COND_DIM)

    # Packed once at init (NOT per forward call).
    w_slab = pack_params(params, INPUT_DIM, HIDDEN_DIM, COND_DIM)

    out = jax.block_until_ready(resnet_block_pallas(x, condition, w_slab))

    ref_bf16 = resnet_block_ref(x, condition, params, compute_dtype=jnp.bfloat16)
    ref_f32 = resnet_block_ref(x, condition, params, compute_dtype=jnp.float32)

    assert out.shape == (B, INPUT_DIM)
    assert jnp.allclose(out, ref_bf16, atol=1e-3, rtol=1e-3), \
        "mismatch vs precision-matched (bf16-in / f32-acc) reference"
    assert jnp.allclose(out, ref_f32, atol=1e-1, rtol=1e-1), \
        "mismatch vs float32 reference beyond bf16 tolerance"

    print("KERNEL_OK")
</pallas_src>

<mosaic_0001>
module attributes {stable_mosaic.version = 11 : i64} {
  func.func @kernel(%arg0: memref<8x128xbf16, #tpu.memory_space<vmem>>, %arg1: memref<128x768xbf16, #tpu.memory_space<vmem>>, %arg2: memref<8x128xf32, #tpu.memory_space<vmem>>) attributes {dimension_semantics = [], scalar_prefetch = 0 : i64, scratch_operands = 0 : i64, tpu.core_type = #tpu.core_type<tc>} {
    %c0 = arith.constant 0 : index
    %c0_0 = arith.constant 0 : index
    %0 = vector.load %arg0[%c0, %c0_0] : memref<8x128xbf16, #tpu.memory_space<vmem>>, vector<8x128xbf16>
    %1 = tpu.iota {dimensions = array<i32: 1>} : vector<8x128xi32>
    %c119_i32 = arith.constant 119 : i32
    %2 = vector.broadcast %c119_i32 : i32 to vector<8x128xi32>
    %3 = arith.cmpi sge, %1, %2 : vector<8x128xi32>
    %cst = arith.constant 0.000000e+00 : bf16
    %4 = vector.broadcast %cst : bf16 to vector<8x128xbf16>
    %5 = arith.select %3, %0, %4 : vector<8x128xi1>, vector<8x128xbf16>
    %cst_1 = arith.constant 0.000000e+00 : bf16
    %6 = vector.broadcast %cst_1 : bf16 to vector<8x128xbf16>
    %7 = arith.select %3, %6, %0 : vector<8x128xi1>, vector<8x128xbf16>
    %c0_2 = arith.constant 0 : index
    %c0_3 = arith.constant 0 : index
    %8 = vector.load %arg1[%c0_2, %c0_3] : memref<128x768xbf16, #tpu.memory_space<vmem>>, vector<128x128xbf16>
    %cst_4 = arith.constant dense<0.000000e+00> : vector<8x128xf32>
    %9 = tpu.matmul %0, %8, %cst_4 {dimension_numbers = #tpu.dot_dimension_numbers<[1], [0], [0], [1], [0, 0, 1, 1], [], []>} : vector<8x128xbf16>, vector<128x128xbf16>, vector<8x128xf32> -> vector<8x128xf32>
    %cst_5 = arith.constant 0.000000e+00 : f32
    %10 = vector.broadcast %cst_5 : f32 to vector<8x128xf32>
    %11 = arith.maximumf %9, %10 : vector<8x128xf32>
    %12 = arith.truncf %11 : vector<8x128xf32> to vector<8x128xbf16>
    %13 = arith.addf %12, %5 : vector<8x128xbf16>
    %c0_6 = arith.constant 0 : index
    %c128 = arith.constant 128 : index
    %14 = vector.load %arg1[%c0_6, %c128] : memref<128x768xbf16, #tpu.memory_space<vmem>>, vector<128x256xbf16>
    %cst_7 = arith.constant dense<0.000000e+00> : vector<8x256xf32>
    %15 = tpu.matmul %13, %14, %cst_7 {dimension_numbers = #tpu.dot_dimension_numbers<[1], [0], [0], [1], [0, 0, 1, 1], [], []>} : vector<8x128xbf16>, vector<128x256xbf16>, vector<8x256xf32> -> vector<8x256xf32>
    %16 = vector.extract_strided_slice %15 {offsets = [0, 0], sizes = [8, 128], strides = [1, 1]} : vector<8x256xf32> to vector<8x128xf32>
    %17 = vector.extract_strided_slice %15 {offsets = [0, 128], sizes = [8, 128], strides = [1, 1]} : vector<8x256xf32> to vector<8x128xf32>
    %18 = arith.negf %17 : vector<8x128xf32>
    %19 = math.exp %18 : vector<8x128xf32>
    %cst_8 = arith.constant 1.000000e+00 : f32
    %20 = vector.broadcast %cst_8 : f32 to vector<8x128xf32>
    %21 = arith.addf %20, %19 : vector<8x128xf32>
    %22 = arith.divf %20, %21 : vector<8x128xf32>
    %23 = arith.mulf %16, %22 : vector<8x128xf32>
    %24 = arith.truncf %23 : vector<8x128xf32> to vector<8x128xbf16>
    %25 = arith.addf %24, %5 : vector<8x128xbf16>
    %c0_9 = arith.constant 0 : index
    %c384 = arith.constant 384 : index
    %26 = vector.load %arg1[%c0_9, %c384] : memref<128x768xbf16, #tpu.memory_space<vmem>>, vector<128x128xbf16>
    %cst_10 = arith.constant dense<0.000000e+00> : vector<8x128xf32>
    %27 = tpu.matmul %25, %26, %cst_10 {dimension_numbers = #tpu.dot_dimension_numbers<[1], [0], [0], [1], [0, 0, 1, 1], [], []>} : vector<8x128xbf16>, vector<128x128xbf16>, vector<8x128xf32> -> vector<8x128xf32>
    %cst_11 = arith.constant 0.000000e+00 : f32
    %28 = vector.broadcast %cst_11 : f32 to vector<8x128xf32>
    %29 = arith.maximumf %27, %28 : vector<8x128xf32>
    %30 = arith.truncf %29 : vector<8x128xf32> to vector<8x128xbf16>
    %31 = arith.addf %30, %5 : vector<8x128xbf16>
    %c0_12 = arith.constant 0 : index
    %c512 = arith.constant 512 : index
    %32 = vector.load %arg1[%c0_12, %c512] : memref<128x768xbf16, #tpu.memory_space<vmem>>, vector<128x256xbf16>
    %cst_13 = arith.constant dense<0.000000e+00> : vector<8x256xf32>
    %33 = tpu.matmul %31, %32, %cst_13 {dimension_numbers = #tpu.dot_dimension_numbers<[1], [0], [0], [1], [0, 0, 1, 1], [], []>} : vector<8x128xbf16>, vector<128x256xbf16>, vector<8x256xf32> -> vector<8x256xf32>
    %34 = vector.extract_strided_slice %33 {offsets = [0, 0], sizes = [8, 128], strides = [1, 1]} : vector<8x256xf32> to vector<8x128xf32>
    %35 = vector.extract_strided_slice %33 {offsets = [0, 128], sizes = [8, 128], strides = [1, 1]} : vector<8x256xf32> to vector<8x128xf32>
    %36 = arith.negf %35 : vector<8x128xf32>
    %37 = math.exp %36 : vector<8x128xf32>
    %cst_14 = arith.constant 1.000000e+00 : f32
    %38 = vector.broadcast %cst_14 : f32 to vector<8x128xf32>
    %39 = arith.addf %38, %37 : vector<8x128xf32>
    %40 = arith.divf %38, %39 : vector<8x128xf32>
    %41 = arith.mulf %34, %40 : vector<8x128xf32>
    %42 = arith.extf %7 : vector<8x128xbf16> to vector<8x128xf32>
    %43 = arith.addf %41, %42 : vector<8x128xf32>
    %c0_15 = arith.constant 0 : index
    %c0_16 = arith.constant 0 : index
    %44 = vector.load %arg2[%c0_15, %c0_16] : memref<8x128xf32, #tpu.memory_space<vmem>>, vector<8x128xf32>
    tpu.vector_store %arg2[%c0_15, %c0_16], %43 {strides = array<i32>} : memref<8x128xf32, #tpu.memory_space<vmem>>, vector<8x128xf32>,
    return
  }
}

</mosaic_0001>

<bundles_post_ra>
// kernel: resnet_block_pallas.1
= control target key start
LH: loop header
LB: loop body
LE: loop exit
PB: predicated region body
PF: predicated region fallthrough
CT: control target
= control target key end

     0   :  { %7 = vsyncpa [#allocation3], 0  ;;  %s860_s0 = inlined_call_operand.vmem [shape: bf16[8,128], index: 0, kind: input, shape index: {}]   ;;  %s861_s1 = inlined_call_operand.hbm [shape: bf16[128,768], index: 1, kind: input, shape index: {}]   ;;  %s862_s2 = inlined_call_operand.hbm [shape: f32[8,128], index: 2, kind: output, shape index: {}]  }
   0x1   :  { %8 = vsyncpa [#allocation4], 0  ;;  %s787_s9 = smov [#allocation2]  }
   0x2   :  { %s16_s10 = sshll.u32 %s787_s9, 4  ;;  %s17_s10 = int_to_ptr.vmem [resolvable:$true] %s16_s10 }
   0x3   :  { %s751_s11 = scalar_lea.vmem %s17_s10, 6144  ;;  %p756_p1 = scmp.lt.s32.totalorder %s17_s10, %s17_s10 }
   0x4   :  { %p752_p0 = scmp.ne.s32.totalorder %s17_s10, %s751_s11  ;;  %p757_p2 = scmp.lt.s32.totalorder %s751_s11, %s751_s11 }
   0x6   :  { %p758_p3 = por %p757_p2, %p756_p1 }
   0x8   :  { %p759_p4 = pnand %p758_p3, %p752_p0 }
   0xa   :  { %762 = shalt.err (!%p759_p4)
}
   0xb   :  { %s788_s12 = smov 384   ;;  %s789_s13 = smov 24  }
   0xc   :  { %22 = dma.hbm_to_vmem [thread:$0]  %s861_s1, 6144, %s17_s10, [#allocation3], %s788_s12, %s788_s12, %s789_s13  }
   0xd   :  { %783 = dma.done.wait [#allocation3], 6144  }
   0xe   :  { %784 = vsyncadd [#allocation3], 4294961152  ;;  %v790_v0 = vmov 0.0   ;;  %vm791_vm0 = vmmov 0   ;;  %v28_v1 = vlaneseq  ;;  %v671_v3 = vld [vmem:[#allocation2 + $0x150] ss:$24 sps:$4 sm:$0xff]  }
   0xf   :  { %624 = vmatprep.subr.bf16.mxu0 %v790_v0  ;;  %640 = vmatprep.mubr.msk.bf16.mxu0 %vm791_vm0, %v790_v0  ;;  %v672_v4 = vld [vmem:[#allocation2 + $0x120] ss:$24 sps:$4 sm:$0xff]   ;;  %v673_v5 = vld [vmem:[#allocation2 + $0xf0] ss:$24 sps:$4 sm:$0xff]   ;;  %v681_v11 = vld [vmem:[#allocation2 + $0x154] ss:$24 sps:$4 sm:$0xff]  }
  0x10   :  { %v29_v2 = vand.u32 127, %v28_v1  ;;  %625 = vmatpush3.bf16.msra.mxu0 %v671_v3  ;;  %v674_v7 = vld [vmem:[#allocation2 + $0xc0] ss:$24 sps:$4 sm:$0xff]   ;;  %v684_v13 = vld [vmem:[#allocation2 + $0x124] ss:$24 sps:$4 sm:$0xff]   ;;  %v792_v30 = vmov 0  }
  0x11   :  { %626 = vmatprep.subr.bf16.mxu0 %v790_v0  ;;  %v824_v8 = vld [vmem:[%s860_s0] sm:$0xf]  ;;  %v679_v10 = vld [vmem:[#allocation2 + $0x158] ss:$24 sps:$4 sm:$0xff]   ;;  %v687_v17 = vld [vmem:[#allocation2 + $0xf4] ss:$24 sps:$4 sm:$0xff]   ;;  %269 = vmatprep.mubr.bf16.mxu1 %v792_v30 }
  0x12   :  { %vm30_vm1 = vcmp.ge.s32.totalorder %v29_v2, 119  ;;  %v682_v12 = vld [vmem:[#allocation2 + $0x128] ss:$24 sps:$4 sm:$0xff]   ;;  %237 = vmatprep.subr.bf16.mxu1 %v679_v10  ;;  %v685_v14 = vld [vmem:[#allocation2 + $0xf8] ss:$24 sps:$4 sm:$0xff]   ;;  %s793_s0 = smov [#allocation5]  }
  0x13   :  { %vm817_vm2 = vmpackc.low %vm30_vm1, %vm30_vm1  ;;  %238 = vmatpush1.bf16.msra.mxu1 %v681_v11  ;;  %v675_v15 = vld [vmem:[#allocation2 + $0x90] ss:$24 sps:$4 sm:$0xff]   ;;  %v676_v16 = vld [vmem:[#allocation2 + $0x60] ss:$24 sps:$4 sm:$0xff]   ;;  %s547_s17 = sshll.u32 %s793_s0, 4  ;;  %s548_s17 = int_to_ptr.vmem [resolvable:$true] %s547_s17 }
  0x14   :  { %627 = vmatpush3.bf16.msra.mxu0 %v672_v4  ;;  %v33_v9 = vsel %vm817_vm2, 0, %v824_v8  ;;  %239 = vmatprep.subr.bf16.mxu1 %v682_v12  ;;  %v688_v18 = vld [vmem:[#allocation2 + $0xc8] ss:$24 sps:$4 sm:$0xff]   ;;  %v690_v19 = vld [vmem:[#allocation2 + $0xc4] ss:$24 sps:$4 sm:$0xff]   ;;  %v841_v33 = vsel %vm817_vm2, %v824_v8, 0  ;;  %p768_p6 = scmp.lt.s32.totalorder %s548_s17, %s548_s17 }
  0x15   :  { %628 = vmatprep.subr.bf16.mxu0 %v790_v0  ;;  %v691_v20 = vld [vmem:[#allocation2 + $0x98] ss:$24 sps:$4 sm:$0xff]   ;;  %v693_v22 = vld [vmem:[#allocation2 + $0x94] ss:$24 sps:$4 sm:$0xff]   ;;  %v694_v23 = vld [vmem:[#allocation2 + $0x68] ss:$24 sps:$4 sm:$0xff]  }
  0x16   :  { %v677_v21 = vld [vmem:[#allocation2 + $0x30] ss:$24 sps:$4 sm:$0xff]   ;;  %v678_v24 = vld [vmem:[#allocation2] ss:$24 sps:$4 sm:$0xff]   ;;  %v696_v25 = vld [vmem:[#allocation2 + $0x64] ss:$24 sps:$4 sm:$0xff]  }
  0x17   :  { %240 = vmatpush1.bf16.msra.mxu1 %v684_v13  ;;  %v697_v26 = vld [vmem:[#allocation2 + $0x38] ss:$24 sps:$4 sm:$0xff]   ;;  %v699_v27 = vld [vmem:[#allocation2 + $0x34] ss:$24 sps:$4 sm:$0xff]   ;;  %v700_v28 = vld [vmem:[#allocation2 + $0x8] ss:$24 sps:$4 sm:$0xff]  }
  0x18   :  { %629 = vmatpush3.bf16.msra.mxu0 %v673_v5  ;;  %241 = vmatprep.subr.bf16.mxu1 %v685_v14  ;;  %v702_v29 = vld [vmem:[#allocation2 + $0x4] ss:$24 sps:$4 sm:$0xff]   ;;  %v711_v47 = vld [vmem:[#allocation2 + $0x160] ss:$24 sps:$4 sm:$0xff]   ;;  %v716_v49 = vld [vmem:[#allocation2 + $0x134] ss:$24 sps:$4 sm:$0xff]  }
  0x19   :  { %630 = vmatprep.subr.bf16.mxu0 %v790_v0  ;;  %v703_v39 = vld [vmem:[#allocation2 + $0x15c] ss:$24 sps:$4 sm:$0xff]   ;;  %v704_v40 = vld [vmem:[#allocation2 + $0x12c] ss:$24 sps:$4 sm:$0xff]   ;;  %v714_v50 = vld [vmem:[#allocation2 + $0x130] ss:$24 sps:$4 sm:$0xff]  }
  0x1a   :  { %v705_v41 = vld [vmem:[#allocation2 + $0xfc] ss:$24 sps:$4 sm:$0xff]   ;;  %v706_v42 = vld [vmem:[#allocation2 + $0xcc] ss:$24 sps:$4 sm:$0xff]   ;;  %v717_v52 = vld [vmem:[#allocation2 + $0x100] ss:$24 sps:$4 sm:$0xff]  }
  0x1b   :  { %242 = vmatpush1.bf16.msra.mxu1 %v687_v17  ;;  %v707_v43 = vld [vmem:[#allocation2 + $0x9c] ss:$24 sps:$4 sm:$0xff]   ;;  %v708_v44 = vld [vmem:[#allocation2 + $0x6c] ss:$24 sps:$4 sm:$0xff]   ;;  %v720_v54 = vld [vmem:[#allocation2 + $0xd0] ss:$24 sps:$4 sm:$0xff]  }
  0x1c   :  { %631 = vmatpush3.bf16.msra.mxu0 %v674_v7  ;;  %243 = vmatprep.subr.bf16.mxu1 %v688_v18  ;;  %v709_v45 = vld [vmem:[#allocation2 + $0x3c] ss:$24 sps:$4 sm:$0xff]   ;;  %v710_v46 = vld [vmem:[#allocation2 + $0xc] ss:$24 sps:$4 sm:$0xff]   ;;  %v723_v56 = vld [vmem:[#allocation2 + $0xa0] ss:$24 sps:$4 sm:$0xff]  }
  0x1d   :  { %632 = vmatprep.subr.bf16.mxu0 %v790_v0  ;;  %v713_v48 = vld [vmem:[#allocation2 + $0x164] ss:$24 sps:$4 sm:$0xff]   ;;  %v722_v53 = vld [vmem:[#allocation2 + $0xd4] ss:$24 sps:$4 sm:$0xff]   ;;  %v726_v58 = vld [vmem:[#allocation2 + $0x70] ss:$24 sps:$4 sm:$0xff]  }
  0x1e   :  { %v719_v51 = vld [vmem:[#allocation2 + $0x104] ss:$24 sps:$4 sm:$0xff]   ;;  %v728_v57 = vld [vmem:[#allocation2 + $0x74] ss:$24 sps:$4 sm:$0xff]   ;;  %v729_v60 = vld [vmem:[#allocation2 + $0x40] ss:$24 sps:$4 sm:$0xff]  }
  0x1f   :  { %244 = vmatpush1.bf16.msra.mxu1 %v690_v19  ;;  %v725_v55 = vld [vmem:[#allocation2 + $0xa4] ss:$24 sps:$4 sm:$0xff]   ;;  %v734_v11 = vld [vmem:[#allocation2 + $0x14] ss:$24 sps:$4 sm:$0xff]   ;;  %v732_v12 = vld [vmem:[#allocation2 + $0x10] ss:$24 sps:$4 sm:$0xff]  }
  0x20   :  { %633 = vmatpush3.bf16.msra.mxu0 %v675_v15  ;;  %245 = vmatprep.subr.bf16.mxu1 %v691_v20  ;;  %v731_v59 = vld [vmem:[#allocation2 + $0x44] ss:$24 sps:$4 sm:$0xff]   ;;  %s763_s18 = scalar_lea.vmem %s548_s17, 128 }
  0x21   :  { %634 = vmatprep.subr.bf16.mxu0 %v790_v0  ;;  %p764_p5 = scmp.ne.s32.totalorder %s548_s17, %s763_s18  ;;  %p769_p7 = scmp.lt.s32.totalorder %s763_s18, %s763_s18 }
  0x23   :  { %246 = vmatpush1.bf16.msra.mxu1 %v693_v22  ;;  %p770_p8 = por %p769_p7, %p768_p6 }
  0x24   :  { %635 = vmatpush3.bf16.msra.mxu0 %v676_v16  ;;  %247 = vmatprep.subr.bf16.mxu1 %v694_v23 }
  0x25   :  { %636 = vmatprep.subr.bf16.mxu0 %v790_v0  ;;  %p771_p9 = pnand %p770_p8, %p764_p5 }
  0x27   :  { %248 = vmatpush1.bf16.msra.mxu1 %v696_v25 }
  0x28   :  { %637 = vmatpush3.bf16.msra.mxu0 %v677_v21  ;;  %249 = vmatprep.subr.bf16.mxu1 %v697_v26 }
  0x29   :  { %638 = vmatprep.subr.bf16.mxu0 %v790_v0 }
  0x2b   :  { %250 = vmatpush1.bf16.msra.mxu1 %v699_v27  ;;  %v538_v27 = vunpack.c.l.bf16 %v33_v9 }
  0x2c   :  { %639 = vmatpush3.bf16.msra.mxu0 %v678_v24  ;;  %251 = vmatprep.subr.bf16.mxu1 %v700_v28 }
  0x2d   :  { %644 = vmatprep.subr.bf16.mxu0 %v790_v0 }
  0x2f   :  { %641 = vmatmul.mubr.bf16.vlgmr.msra.gmra.mxu0 %v824_v8  ;;  %252 = vmatpush1.bf16.msra.mxu1 %v702_v29 }
  0x30   :  { %660 = vmatprep.mubr.msk.bf16.mxu0 %vm791_vm0, %v790_v0  ;;  %645 = vmatpush3.bf16.msra.mxu0 %v703_v39 }
  0x31   :  { %646 = vmatprep.subr.bf16.mxu0 %v790_v0  ;;  %490 = vmatprep.subr.bf16.mxu1 %v713_v48 }
  0x34   :  { %647 = vmatpush3.bf16.msra.mxu0 %v704_v40 }
  0x35   :  { %648 = vmatprep.subr.bf16.mxu0 %v790_v0 }
  0x38   :  { %649 = vmatpush3.bf16.msra.mxu0 %v705_v41 }
  0x39   :  { %650 = vmatprep.subr.bf16.mxu0 %v790_v0 }
  0x3c   :  { %651 = vmatpush3.bf16.msra.mxu0 %v706_v42 }
  0x3d   :  { %652 = vmatprep.subr.bf16.mxu0 %v790_v0 }
  0x40   :  { %653 = vmatpush3.bf16.msra.mxu0 %v707_v43 }
  0x41   :  { %654 = vmatprep.subr.bf16.mxu0 %v790_v0 }
  0x44   :  { %655 = vmatpush3.bf16.msra.mxu0 %v708_v44 }
  0x45   :  { %656 = vmatprep.subr.bf16.mxu0 %v790_v0 }
  0x48   :  { %657 = vmatpush3.bf16.msra.mxu0 %v709_v45 }
  0x49   :  { %658 = vmatprep.subr.bf16.mxu0 %v790_v0 }
  0x4c   :  { %659 = vmatpush3.bf16.msra.mxu0 %v710_v46 }
  0xef   :  { %v132_v31 = vpop.f32.mrf.mxu0 }
  0xf0   :  { %v138_v32 = vmax.f32 %v132_v31, 0.0 }
  0xf1   :  { %v642_v34 = vpop.f32.mrf.mxu0 }
  0xf2   :  { %v139_v35 = vpack.c.bf16 %v138_v32, %v138_v32 }
  0xf3   :  { %v135_v36 = vpop.f32.mrf.mxu0 }
  0xf4   :  { %v140_v37 = vadd.bf16 %v139_v35, %v841_v33 }
  0xf5   :  { %v643_v38 = vpop.f32.mrf.mxu0 }
  0xf6   :  { %270 = vmatmul.mubr.bf16.vlgmr.msra.gmra.mxu1 %v140_v37 }
  0xf7   :  { %522 = vmatprep.mubr.bf16.mxu1 %v792_v30  ;;  %491 = vmatpush1.bf16.msra.mxu1 %v711_v47 }
  0xf8   :  { %492 = vmatprep.subr.bf16.mxu1 %v716_v49 }
  0xfb   :  { %493 = vmatpush1.bf16.msra.mxu1 %v714_v50 }
  0xfc   :  { %494 = vmatprep.subr.bf16.mxu1 %v719_v51 }
  0xff   :  { %495 = vmatpush1.bf16.msra.mxu1 %v717_v52 }
 0x100   :  { %496 = vmatprep.subr.bf16.mxu1 %v722_v53 }
 0x103   :  { %497 = vmatpush1.bf16.msra.mxu1 %v720_v54 }
 0x104   :  { %498 = vmatprep.subr.bf16.mxu1 %v725_v55 }
 0x107   :  { %499 = vmatpush1.bf16.msra.mxu1 %v723_v56 }
 0x108   :  { %500 = vmatprep.subr.bf16.mxu1 %v728_v57 }
 0x10b   :  { %501 = vmatpush1.bf16.msra.mxu1 %v726_v58 }
 0x10c   :  { %502 = vmatprep.subr.bf16.mxu1 %v731_v59 }
 0x10f   :  { %503 = vmatpush1.bf16.msra.mxu1 %v729_v60 }
 0x110   :  { %504 = vmatprep.subr.bf16.mxu1 %v734_v11 }
 0x113   :  { %505 = vmatpush1.bf16.msra.mxu1 %v732_v12 }
 0x1b6   :  { %v271_v61 = vpop.f32.mrf.mxu1 }
 0x1b8   :  { %v273_v62 = vpop.f32.mrf.mxu1 }
 0x1b9   :  { %v580_v63 = vmul.f32 -1.442695, %v273_v62 }
 0x1ba   :  { %v275_v0 = vpop.f32.mrf.mxu1 }
 0x1bb   :  { %735 = vpow2.f32 %v580_v63 }
 0x1bc   :  { %v276_v1 = vpop.f32.mrf.mxu1 }
 0x1c8   :  { %v736_v2 = vpop.eup %735 }
 0x1c9   :  { %v281_v3 = vadd.f32 1.0, %v736_v2 }
 0x1cb   :  { %737 = vrcp.f32 %v281_v3 }
 0x1d8   :  { %v738_v4 = vpop.eup %737 }
 0x1d9   :  { %v284_v5 = vmul.f32 %v738_v4, %v271_v61 }
 0x1db   :  { %v285_v7 = vpack.c.bf16 %v284_v5, %v284_v5 }
 0x1dd   :  { %v286_v10 = vadd.bf16 %v285_v7, %v841_v33 }
 0x1df   :  { %661 = vmatmul.mubr.bf16.vlgmr.msra.gmra.mxu0 %v286_v10 }
 0x29f   :  { %v385_v13 = vpop.f32.mrf.mxu0 }
 0x2a0   :  { %v391_v14 = vmax.f32 %v385_v13, 0.0 }
 0x2a1   :  { %v662_v15 = vpop.f32.mrf.mxu0 }
 0x2a2   :  { %v392_v16 = vpack.c.bf16 %v391_v14, %v391_v14 }
 0x2a3   :  { %v388_v17 = vpop.f32.mrf.mxu0 }
 0x2a4   :  { %v393_v18 = vadd.bf16 %v392_v16, %v841_v33 }
 0x2a5   :  { %v663_v19 = vpop.f32.mrf.mxu0 }
 0x2a6   :  { %523 = vmatmul.mubr.bf16.vlgmr.msra.gmra.mxu1 %v393_v18 }
 0x366   :  { %v524_v20 = vpop.f32.mrf.mxu1 }
 0x368   :  { %v526_v21 = vpop.f32.mrf.mxu1 }
 0x369   :  { %v605_v22 = vmul.f32 -1.442695, %v526_v21 }
 0x36a   :  { %v528_v23 = vpop.f32.mrf.mxu1 }
 0x36b   :  { %739 = vpow2.f32 %v605_v22 }
 0x36c   :  { %v529_v24 = vpop.f32.mrf.mxu1 }
 0x378   :  { %v740_v25 = vpop.eup %739 }
 0x379   :  { %v534_v26 = vadd.f32 1.0, %v740_v25 }
 0x37b   :  { %741 = vrcp.f32 %v534_v26 }
 0x388   :  { %v742_v28 = vpop.eup %741 }
 0x389   :  { %v537_v29 = vmul.f32 %v742_v28, %v524_v20 }
 0x38b   :  { %v539_v30 = vadd.f32 %v538_v27, %v537_v29 }
 0x38d   :  { %540 = vst [vmem:[#allocation5] sm:$0xff] %v539_v30 }
 0x38e   :  { %774 = shalt.err (!%p771_p9)
}
 0x38f   :  { %550 = dma.vmem_to_hbm [thread:$0]  %s548_s17, 128, %s862_s2, [#allocation4]  }
 0x390   :  { %785 = dma.done.wait [#allocation4], 128  }
 0x391   :  { %786 = vsyncadd [#allocation4], 4294967168 }
 0x392   :  { %554 = vsyncpa [#allocation3], 1 }
 0x393   :  { %555 = vsyncpa [#allocation4], 1 }

</bundles_post_ra>
